<compile_context>
chip_gen: v7x
topology: tpu7x:2x2x1
jax: 0.10.0
libtpu: 0.0.40
codegen_flags: <defaults>
</compile_context>

<pallas_src>
import jax
import jax.numpy as jnp
from jax.experimental import pallas as pl
from jax.experimental.pallas import tpu as pltpu

BN_EPS = 1e-5


def _round_up(x, m):
    return (x + m - 1) // m * m


def critic_kernel(sa_ref, slab_ref, out_ref):
    # sa_ref   : (B, SA)  SA = round_up(S + A, 8); cols [0:S]=state, [S:S+A]=action, rest 0
    # slab_ref : (R, L)   L = round_up(max(H1, H2), 128); packed parameter slab:
    #     rows [0        : SA)        W1 block   (w1 in [0:S, 0:H1], rest 0)
    #     rows [SA       : SA+8)      BN block   (row0=b1, row1=gamma, row2=beta over [0:H1])
    #     rows [SA+8     : SA+8+L)    W2S block  (w2[0:H1] in [0:H1, 0:H2], rest 0)
    #     rows [SA+8+L   : 2*SA+8+L)  W2A block  (w2[H1:H1+A] in [S:S+A, 0:H2], rest 0)
    #     rows [2*SA+8+L : 2*SA+16+L) AUX block  (row0=b2, row1=w3 over [0:H2]; b3 at [2,0])
    # out_ref  : (B, 1)
    B, SA = sa_ref.shape
    L = slab_ref.shape[1]

    o_w1 = 0
    o_bn = SA
    o_w2s = o_bn + 8
    o_w2a = o_w2s + L
    o_aux = o_w2a + SA

    sa = sa_ref[...]                                            # (B, SA)

    bn = slab_ref[o_bn:o_bn + 8, :]                             # (8, L)
    b1 = bn[0:1, :]
    gamma = bn[1:2, :]
    beta = bn[2:3, :]

    # --- fcs1 + relu (padded lanes stay exactly 0) --------------------------
    h1 = jnp.dot(sa, slab_ref[o_w1:o_w1 + SA, :],
                 preferred_element_type=jnp.float32) + b1
    h1 = jnp.maximum(h1, 0.0)                                   # (B, L)

    # --- BatchNorm1d (training-mode batch stats) via uncentered moments -----
    inv_b = jnp.float32(1.0 / B)
    s = jnp.sum(h1, axis=0, keepdims=True)                      # (1, L)
    ss = jnp.sum(h1 * h1, axis=0, keepdims=True)                # (1, L)
    mean = s * inv_b
    var = jnp.maximum(ss * inv_b - mean * mean, 0.0)            # clamp: no NaN from rsqrt
    scale = gamma * jax.lax.rsqrt(var + BN_EPS)
    shift = beta - mean * scale
    xs = h1 * scale + shift                                     # (B, L); padded lanes stay 0

    # --- fc2 on concat([xs, action]) folded into two aligned matmuls --------
    aux = slab_ref[o_aux:o_aux + 8, :]                          # (8, L)
    b2 = aux[0:1, :]
    h2 = (jnp.dot(xs, slab_ref[o_w2s:o_w2s + L, :], preferred_element_type=jnp.float32)
          + jnp.dot(sa, slab_ref[o_w2a:o_w2a + SA, :], preferred_element_type=jnp.float32)
          + b2)
    h2 = jnp.maximum(h2, 0.0)                                   # (B, L); padded lanes 0

    # --- fc3: VPU broadcast-multiply + lane reduce -> (B, 1) ----------------
    w3 = aux[1:2, :]                                            # (1, L)
    b3 = aux[2:3, 0:1]                                          # (1, 1)
    out_ref[...] = jnp.sum(h2 * w3, axis=-1, keepdims=True) + b3


def critic_forward(state, action, slab):
    """state: (B, S) f32, action: (B, A) f32, slab: packed params -> (B, 1) f32."""
    B, S = state.shape
    A = action.shape[1]
    # PyTorch BatchNorm1d training-mode requires batch size > 1; B == 1 would
    # also hit the torch.squeeze(action, 0) rank-change path.
    assert B > 1, "Critic forward (training-mode BatchNorm) requires batch size > 1"

    SA = _round_up(S + A, 8)
    L = slab.shape[1]
    assert slab.shape[0] == 2 * SA + 16 + L, "slab layout mismatch with (S, A)"

    sa = jnp.concatenate([state.astype(jnp.float32),
                          action.astype(jnp.float32)], axis=1)
    if SA > S + A:
        sa = jnp.pad(sa, ((0, 0), (0, SA - (S + A))))

    vmem = pl.BlockSpec(memory_space=pltpu.MemorySpace.VMEM)
    bytes_accessed = 4 * (sa.size + slab.size + B)
    flops = 2 * B * (SA * L + L * L + SA * L + L) + 12 * B * L
    cost = pl.CostEstimate(flops=flops, transcendentals=L,
                           bytes_accessed=bytes_accessed)

    return pl.pallas_call(
        critic_kernel,
        out_shape=jax.ShapeDtypeStruct((B, 1), jnp.float32),
        in_specs=[vmem, vmem],
        out_specs=vmem,
        cost_estimate=cost,
    )(sa, slab)


critic_forward_jit = jax.jit(critic_forward)


def init_params(key, state_size, action_size, hidden=(64, 32)):
    """Synthetic init mirroring the PyTorch module (weights stored as [in, out])."""
    H1, H2 = hidden
    ks = jax.random.split(key, 6)
    # hidden_init in the reference uses weight.size()[0] == out_features.
    lim1 = 1.0 / (H1 ** 0.5)
    lim2 = 1.0 / (H2 ** 0.5)
    return {
        "w1": jax.random.uniform(ks[0], (state_size, H1), jnp.float32, -lim1, lim1),
        "b1": jax.random.uniform(ks[1], (H1,), jnp.float32, -lim1, lim1),
        "gamma": jnp.ones((H1,), jnp.float32),
        "beta": jnp.zeros((H1,), jnp.float32),
        "w2": jax.random.uniform(ks[2], (H1 + action_size, H2), jnp.float32, -lim2, lim2),
        "b2": jax.random.uniform(ks[3], (H2,), jnp.float32, -lim2, lim2),
        "w3": jax.random.uniform(ks[4], (H2,), jnp.float32, -0.003, 0.003),
        "b3": jax.random.uniform(ks[5], (), jnp.float32, -0.003, 0.003),
    }


def pack_params(p, state_size, action_size):
    """Pack all parameters into one zero-padded, sublane-aligned 128-lane slab."""
    S, A = state_size, action_size
    w1, w2 = p["w1"], p["w2"]
    H1 = w1.shape[1]
    H2 = w2.shape[1]
    L = _round_up(max(H1, H2), 128)
    SA = _round_up(S + A, 8)
    assert H1 <= L and H2 <= L and S + A <= SA

    def blk(rows):
        return jnp.zeros((rows, L), jnp.float32)

    w1_blk = blk(SA).at[:S, :H1].set(w1)
    bn_blk = (blk(8)
              .at[0, :H1].set(p["b1"])
              .at[1, :H1].set(p["gamma"])
              .at[2, :H1].set(p["beta"]))
    w2s_blk = blk(L).at[:H1, :H2].set(w2[:H1])
    w2a_blk = blk(SA).at[S:S + A, :H2].set(w2[H1:])
    aux_blk = (blk(8)
               .at[0, :H2].set(p["b2"])
               .at[1, :H2].set(p["w3"])
               .at[2, 0].set(p["b3"]))
    return jnp.concatenate([w1_blk, bn_blk, w2s_blk, w2a_blk, aux_blk], axis=0)


def reference_forward(state, action, p):
    """Pure-JAX reference of the same math (centered-variance BN) for checking."""
    h1 = jnp.maximum(state @ p["w1"] + p["b1"], 0.0)
    mean = jnp.mean(h1, axis=0, keepdims=True)
    var = jnp.mean((h1 - mean) ** 2, axis=0, keepdims=True)
    xs = p["gamma"] * (h1 - mean) * jax.lax.rsqrt(var + BN_EPS) + p["beta"]
    x = jnp.concatenate([xs, action], axis=1)
    h2 = jnp.maximum(x @ p["w2"] + p["b2"], 0.0)
    return h2 @ p["w3"][:, None] + p["b3"]


if __name__ == "__main__":
    B, STATE, ACTION = 8, 16, 4
    HIDDEN = (64, 32)

    key = jax.random.PRNGKey(0)
    kp, ks, ka = jax.random.split(key, 3)
    params = init_params(kp, STATE, ACTION, HIDDEN)
    slab = pack_params(params, STATE, ACTION)          # built once, reused per call
    state = jax.random.normal(ks, (B, STATE), jnp.float32)
    action = jax.random.normal(ka, (B, ACTION), jnp.float32)

    q = critic_forward_jit(state, action, slab)
    q = jax.block_until_ready(q)

    q_ref = reference_forward(state, action, params)
    assert q.shape == (B, 1)
    assert jnp.allclose(q, q_ref, atol=1e-4, rtol=1e-3), (q, q_ref)
    print("KERNEL_OK")
</pallas_src>

<mosaic_0001>
module attributes {stable_mosaic.version = 11 : i64} {
  func.func @critic_kernel(%arg0: memref<8x24xf32, #tpu.memory_space<vmem>>, %arg1: memref<192x128xf32, #tpu.memory_space<vmem>>, %arg2: memref<8x1xf32, #tpu.memory_space<vmem>>) attributes {dimension_semantics = [], scalar_prefetch = 0 : i64, scratch_operands = 0 : i64, tpu.core_type = #tpu.core_type<tc>} {
    %c0 = arith.constant 0 : index
    %c0_0 = arith.constant 0 : index
    %0 = vector.load %arg0[%c0, %c0_0] : memref<8x24xf32, #tpu.memory_space<vmem>>, vector<8x24xf32>
    %c24 = arith.constant 24 : index
    %c0_1 = arith.constant 0 : index
    %1 = vector.load %arg1[%c24, %c0_1] : memref<192x128xf32, #tpu.memory_space<vmem>>, vector<8x128xf32>
    %2 = vector.extract_strided_slice %1 {offsets = [0, 0], sizes = [1, 128], strides = [1, 1]} : vector<8x128xf32> to vector<1x128xf32>
    %3 = vector.extract_strided_slice %1 {offsets = [1, 0], sizes = [1, 128], strides = [1, 1]} : vector<8x128xf32> to vector<1x128xf32>
    %4 = vector.extract_strided_slice %1 {offsets = [2, 0], sizes = [1, 128], strides = [1, 1]} : vector<8x128xf32> to vector<1x128xf32>
    %c0_2 = arith.constant 0 : index
    %c0_3 = arith.constant 0 : index
    %5 = vector.load %arg1[%c0_2, %c0_3] : memref<192x128xf32, #tpu.memory_space<vmem>>, vector<24x128xf32>
    %cst = arith.constant dense<0.000000e+00> : vector<8x128xf32>
    %6 = tpu.matmul %0, %5, %cst {dimension_numbers = #tpu.dot_dimension_numbers<[1], [0], [0], [1], [0, 0, 1, 1], [], []>} : vector<8x24xf32>, vector<24x128xf32>, vector<8x128xf32> -> vector<8x128xf32>
    %7 = vector.broadcast %2 : vector<1x128xf32> to vector<8x128xf32>
    %8 = arith.addf %6, %7 : vector<8x128xf32>
    %cst_4 = arith.constant 0.000000e+00 : f32
    %9 = vector.broadcast %cst_4 : f32 to vector<8x128xf32>
    %10 = arith.maximumf %8, %9 : vector<8x128xf32>
    %cst_5 = arith.constant dense<0.000000e+00> : vector<128xf32>
    %11 = vector.multi_reduction <add>, %10, %cst_5 [0] : vector<8x128xf32> to vector<128xf32>
    %12 = vector.shape_cast %11 : vector<128xf32> to vector<1x128xf32>
    %13 = arith.mulf %10, %10 : vector<8x128xf32>
    %cst_6 = arith.constant dense<0.000000e+00> : vector<128xf32>
    %14 = vector.multi_reduction <add>, %13, %cst_6 [0] : vector<8x128xf32> to vector<128xf32>
    %15 = vector.shape_cast %14 : vector<128xf32> to vector<1x128xf32>
    %cst_7 = arith.constant 1.250000e-01 : f32
    %16 = vector.broadcast %cst_7 : f32 to vector<1x128xf32>
    %17 = arith.mulf %12, %16 : vector<1x128xf32>
    %cst_8 = arith.constant 1.250000e-01 : f32
    %18 = vector.broadcast %cst_8 : f32 to vector<1x128xf32>
    %19 = arith.mulf %15, %18 : vector<1x128xf32>
    %20 = arith.mulf %17, %17 : vector<1x128xf32>
    %21 = arith.subf %19, %20 : vector<1x128xf32>
    %cst_9 = arith.constant 0.000000e+00 : f32
    %22 = vector.broadcast %cst_9 : f32 to vector<1x128xf32>
    %23 = arith.maximumf %21, %22 : vector<1x128xf32>
    %cst_10 = arith.constant 9.99999974E-6 : f32
    %24 = vector.broadcast %cst_10 : f32 to vector<1x128xf32>
    %25 = arith.addf %23, %24 : vector<1x128xf32>
    %26 = math.rsqrt %25 : vector<1x128xf32>
    %27 = arith.mulf %3, %26 : vector<1x128xf32>
    %28 = arith.mulf %17, %27 : vector<1x128xf32>
    %29 = arith.subf %4, %28 : vector<1x128xf32>
    %30 = vector.broadcast %27 : vector<1x128xf32> to vector<8x128xf32>
    %31 = arith.mulf %10, %30 : vector<8x128xf32>
    %32 = vector.broadcast %29 : vector<1x128xf32> to vector<8x128xf32>
    %33 = arith.addf %31, %32 : vector<8x128xf32>
    %c184 = arith.constant 184 : index
    %c0_11 = arith.constant 0 : index
    %34 = vector.load %arg1[%c184, %c0_11] : memref<192x128xf32, #tpu.memory_space<vmem>>, vector<8x128xf32>
    %35 = vector.extract_strided_slice %34 {offsets = [0, 0], sizes = [1, 128], strides = [1, 1]} : vector<8x128xf32> to vector<1x128xf32>
    %c32 = arith.constant 32 : index
    %c0_12 = arith.constant 0 : index
    %36 = vector.load %arg1[%c32, %c0_12] : memref<192x128xf32, #tpu.memory_space<vmem>>, vector<128x128xf32>
    %cst_13 = arith.constant dense<0.000000e+00> : vector<8x128xf32>
    %37 = tpu.matmul %33, %36, %cst_13 {dimension_numbers = #tpu.dot_dimension_numbers<[1], [0], [0], [1], [0, 0, 1, 1], [], []>} : vector<8x128xf32>, vector<128x128xf32>, vector<8x128xf32> -> vector<8x128xf32>
    %c160 = arith.constant 160 : index
    %c0_14 = arith.constant 0 : index
    %38 = vector.load %arg1[%c160, %c0_14] : memref<192x128xf32, #tpu.memory_space<vmem>>, vector<24x128xf32>
    %cst_15 = arith.constant dense<0.000000e+00> : vector<8x128xf32>
    %39 = tpu.matmul %0, %38, %cst_15 {dimension_numbers = #tpu.dot_dimension_numbers<[1], [0], [0], [1], [0, 0, 1, 1], [], []>} : vector<8x24xf32>, vector<24x128xf32>, vector<8x128xf32> -> vector<8x128xf32>
    %40 = arith.addf %37, %39 : vector<8x128xf32>
    %41 = vector.broadcast %35 : vector<1x128xf32> to vector<8x128xf32>
    %42 = arith.addf %40, %41 : vector<8x128xf32>
    %cst_16 = arith.constant 0.000000e+00 : f32
    %43 = vector.broadcast %cst_16 : f32 to vector<8x128xf32>
    %44 = arith.maximumf %42, %43 : vector<8x128xf32>
    %45 = vector.extract_strided_slice %34 {offsets = [1, 0], sizes = [1, 128], strides = [1, 1]} : vector<8x128xf32> to vector<1x128xf32>
    %46 = vector.extract_strided_slice %34 {offsets = [2, 0], sizes = [1, 1], strides = [1, 1]} : vector<8x128xf32> to vector<1x1xf32>
    %47 = vector.broadcast %45 : vector<1x128xf32> to vector<8x128xf32>
    %48 = arith.mulf %44, %47 : vector<8x128xf32>
    %cst_17 = arith.constant dense<0.000000e+00> : vector<8xf32>
    %49 = vector.multi_reduction <add>, %48, %cst_17 [1] : vector<8x128xf32> to vector<8xf32>
    %50 = vector.shape_cast %49 : vector<8xf32> to vector<8x1xf32>
    %51 = vector.broadcast %46 : vector<1x1xf32> to vector<8x1xf32>
    %52 = arith.addf %50, %51 : vector<8x1xf32>
    %c0_18 = arith.constant 0 : index
    %c0_19 = arith.constant 0 : index
    %53 = vector.load %arg2[%c0_18, %c0_19] : memref<8x1xf32, #tpu.memory_space<vmem>>, vector<8x1xf32>
    tpu.vector_store %arg2[%c0_18, %c0_19], %52 {strides = array<i32>} : memref<8x1xf32, #tpu.memory_space<vmem>>, vector<8x1xf32>,
    return
  }
}

</mosaic_0001>

<bundles_post_ra>
// kernel: critic_forward.1
= control target key start
LH: loop header
LB: loop body
LE: loop exit
PB: predicated region body
PF: predicated region fallthrough
CT: control target
= control target key end

     0   :  { %7 = vsyncpa [#allocation3], 0  ;;  %s472_s9 = smov [#allocation2]   ;;  %s516_s0 = inlined_call_operand.vmem [shape: f32[8,24], index: 0, kind: input, shape index: {}]   ;;  %s517_s1 = inlined_call_operand.hbm [shape: f32[192,128], index: 1, kind: input, shape index: {}]   ;;  %s518_s2 = inlined_call_operand.vmem [shape: f32[8,1], index: 2, kind: output, shape index: {}]  }
   0x1   :  { %s15_s10 = sshll.u32 %s472_s9, 4  ;;  %s448_s13 = scalar_lea.hbm %s517_s1, 3072  ;;  %s16_s10 = int_to_ptr.vmem [resolvable:$true] %s15_s10 }
   0x2   :  { %p449_p0 = scmp.ne.s32.totalorder %s517_s1, %s448_s13  ;;  %p452_p1 = scmp.lt.u32.totalorder %s448_s13, %s517_s1 }
   0x4   :  { %p454_p2 = pnand %p452_p1, %p449_p0 }
   0x6   :  { %457 = shalt.err (!%p454_p2)
}
   0x7   :  { %s458_s18 = scalar_lea.vmem %s16_s10, 3072  ;;  %p463_p4 = scmp.lt.s32.totalorder %s16_s10, %s16_s10 }
   0x8   :  { %p459_p3 = scmp.ne.s32.totalorder %s16_s10, %s458_s18  ;;  %p464_p5 = scmp.lt.s32.totalorder %s458_s18, %s458_s18 }
   0xa   :  { %p465_p6 = por %p464_p5, %p463_p4 }
   0xc   :  { %p466_p7 = pnand %p465_p6, %p459_p3 }
   0xe   :  { %469 = shalt.err (!%p466_p7)
}
   0xf   :  { %s473_s19 = smov 128   ;;  %s474_s20 = smov 8  }
  0x10   :  { %21 = dma.hbm_to_vmem [thread:$0]  %s517_s1, 3072, %s16_s10, [#allocation3], %s473_s19, %s473_s19, %s474_s20  }
  0x11   :  { %470 = dma.done.wait [#allocation3], 3072  }
  0x12   :  { %471 = vsyncadd [#allocation3], 4294964224  ;;  %v475_v0 = vmov 0.0|0.0   ;;  %vm476_vm0 = vmmov 0   ;;  %v477_v1 = vmov 0.0   ;;  %v27_v2 = vld [vmem:[#allocation2] sm:$0xff]  ;;  %v30_v35 = vlaneseq }
  0x13   :  { %410 = vmatprep.subr.bf16.mxu1 %v475_v0  ;;  %363 = vmatprep.mubr.msk.f32.mxu1 %vm476_vm0, %v477_v1  ;;  %v28_v3 = vld [vmem:[#allocation2 + $0x8] sm:$0xff]  ;;  %v29_v5 = vld [vmem:[#allocation2 + $0x10] sm:$0xff]  ;;  %v25_v6 = vld [vmem:[%s516_s0] sm:$0xff]  ;;  %vm34_vm1 = vcmask 195584   ;;  %vm323_vm2 = vcmask 7168  }
  0x14   :  { %416 = vmatprep.subr.bf16.mxu0 %v475_v0  ;;  %407 = vmatprep.mubr.msk.f32.mxu0 %vm476_vm0, %v477_v1  ;;  %v411_v4 = vpack.c.bf16 %v28_v3, %v27_v2  ;;  %v146_v7 = vld [vmem:[#allocation2 + $0x20] sm:$0xff]  ;;  %v147_v8 = vld [vmem:[#allocation2 + $0x28] sm:$0xff]  ;;  %v148_v10 = vld [vmem:[#allocation2 + $0x30] sm:$0xff]  ;;  %v31_v36 = vshrl.u32 %v30_v35, 7 }
  0x15   :  { %v417_v9 = vpack.c.bf16 %v147_v8, %v146_v7  ;;  %v149_v11 = vld [vmem:[#allocation2 + $0x38] sm:$0xff]  ;;  %v150_v13 = vld [vmem:[#allocation2 + $0x40] sm:$0xff]  ;;  %v151_v14 = vld [vmem:[#allocation2 + $0x48] sm:$0xff] }
  0x16   :  { %412 = vmatpush3.bf16.msra.mxu1 %v411_v4  ;;  %v420_v12 = vpack.c.bf16 %v149_v11, %v148_v10  ;;  %v423_v15 = vpack.c.bf16 %v151_v14, %v150_v13  ;;  %v152_v16 = vld [vmem:[#allocation2 + $0x50] sm:$0xff]  ;;  %v153_v17 = vld [vmem:[#allocation2 + $0x58] sm:$0xff]  ;;  %v154_v19 = vld [vmem:[#allocation2 + $0x60] sm:$0xff]  ;;  %v32_v37 = vsub.s32 0, %v31_v36 }
  0x17   :  { %361 = vmatprep.subr.mxu1 %v477_v1  ;;  %418 = vmatpush3.bf16.msra.mxu0 %v417_v9  ;;  %v426_v18 = vpack.c.bf16 %v153_v17, %v152_v16  ;;  %v155_v20 = vld [vmem:[#allocation2 + $0x68] sm:$0xff]  ;;  %v156_v22 = vld [vmem:[#allocation2 + $0x70] sm:$0xff]  ;;  %v157_v23 = vld [vmem:[#allocation2 + $0x78] sm:$0xff] }
  0x18   :  { %419 = vmatprep.subr.bf16.mxu0 %v475_v0  ;;  %v429_v21 = vpack.c.bf16 %v155_v20, %v154_v19  ;;  %v432_v24 = vpack.c.bf16 %v157_v23, %v156_v22  ;;  %v158_v25 = vld [vmem:[#allocation2 + $0x80] sm:$0xff]  ;;  %v159_v26 = vld [vmem:[#allocation2 + $0x88] sm:$0xff]  ;;  %v160_v31 = vld [vmem:[#allocation2 + $0x90] sm:$0xff] }
  0x19   :  { %v435_v27 = vpack.c.bf16 %v159_v26, %v158_v25  ;;  %v162_v28 = vld [vmem:[#allocation2 + $0xa0] sm:$0xff]  ;;  %v163_v29 = vld [vmem:[#allocation2 + $0xa8] sm:$0xff]  ;;  %v161_v32 = vld [vmem:[#allocation2 + $0x98] sm:$0xff] }
  0x1a   :  { %362 = vmatpush3.msra.mxu1 %v29_v5  ;;  %v414_v30 = vpack.c.bf16 %v163_v29, %v162_v28  ;;  %v438_v33 = vpack.c.bf16 %v161_v32, %v160_v31  ;;  %v164_v34 = vld [vmem:[#allocation2 + $0xb0] sm:$0xff]  ;;  %v26_v38 = vld [vmem:[#allocation2 + $0x18] sm:$0xff]  ;;  %v142_v5 = vsub.s32 2, %v31_v36 }
  0x1b   :  { %364 = vmatmul.mubr.msk.f32.vlgmr.msra.gmra.mrb[0].mxu1 %vm34_vm1, %v25_v6  ;;  %413 = vmatprep.subr.bf16.mxu1 %v475_v0  ;;  %v33_v39 = vrot.slane %v26_v38, %v32_v37 }
  0x1c   :  { %372 = vmatprep.mubr.msk.f32.mxu1 %vm476_vm0, %v477_v1  ;;  %421 = vmatpush3.bf16.msra.mxu0 %v420_v12  ;;  %v145_v12 = vld [vmem:[#allocation2 + $0xb8] sm:$0xff] }
  0x1d   :  { %422 = vmatprep.subr.bf16.mxu0 %v475_v0  ;;  %415 = vmatpush3.bf16.msra.mxu1 %v414_v30  ;;  %v308_v13 = vrot.slane %v145_v12, %v32_v37 }
  0x1e   :  { %370 = vmatprep.subr.mxu1 %v477_v1  ;;  %v137_v1 = vsub.s32 1, %v31_v36 }
  0x20   :  { %424 = vmatpush3.bf16.msra.mxu0 %v423_v15 }
  0x21   :  { %425 = vmatprep.subr.bf16.mxu0 %v475_v0  ;;  %371 = vmatpush3.msra.mxu1 %v164_v34 }
  0x22   :  { %373 = vmatmul.mubr.msk.f32.vlgmr.msra.gmra.mrb[2].mxu1 %vm34_vm1, %v25_v6 }
  0x24   :  { %427 = vmatpush3.bf16.msra.mxu0 %v426_v18  ;;  %v314_v18 = vrot.slane %v145_v12, %v137_v1 }
  0x25   :  { %428 = vmatprep.subr.bf16.mxu0 %v475_v0 }
  0x28   :  { %430 = vmatpush3.bf16.msra.mxu0 %v429_v21  ;;  %v321_v21 = vrot.slane %v145_v12, %v142_v5 }
  0x29   :  { %431 = vmatprep.subr.bf16.mxu0 %v475_v0 }
  0x2c   :  { %433 = vmatpush3.bf16.msra.mxu0 %v432_v24 }
  0x2d   :  { %434 = vmatprep.subr.bf16.mxu0 %v475_v0 }
  0x30   :  { %436 = vmatpush3.bf16.msra.mxu0 %v435_v27 }
  0x31   :  { %437 = vmatprep.subr.bf16.mxu0 %v475_v0 }
  0x34   :  { %439 = vmatpush3.bf16.msra.mxu0 %v438_v33 }
  0xee   :  { %v104_v40 = vpop.f32.mrb[0].mxu1 }
  0xef   :  { %v105_v41 = vadd.f32 %v104_v40, %v33_v39  ;;  %v365_v42 = vpop.f32.mrb[1].mxu1 }
  0xf1   :  { %v108_v43 = vmax.f32 %v105_v41, 0.0 }
  0xf3   :  { %v109_v44 = vrot.slane %v108_v43, 4  ;;  %v115_v45 = vmul.f32 %v108_v43, %v108_v43 }
  0xf5   :  { %v110_v46 = vadd.f32 %v109_v44, %v108_v43  ;;  %v116_v47 = vrot.slane %v115_v45, 4  ;;  %v231_v10 = vpop.f32.mrb[2].mxu1 }
  0xf6   :  { %v374_v11 = vpop.f32.mrb[3].mxu1 }
  0xf7   :  { %v111_v48 = vrot.slane %v110_v46, 2  ;;  %v117_v49 = vadd.f32 %v116_v47, %v115_v45 }
  0xf9   :  { %v112_v50 = vadd.f32 %v111_v48, %v110_v46  ;;  %v118_v51 = vrot.slane %v117_v49, 2 }
  0xfb   :  { %v113_v52 = vrot.slane %v112_v50, 1  ;;  %v119_v53 = vadd.f32 %v118_v51, %v117_v49 }
  0xfd   :  { %v114_v54 = vadd.f32 %v113_v52, %v112_v50  ;;  %v120_v55 = vrot.slane %v119_v53, 1 }
  0xff   :  { %v121_v56 = vadd.f32 %v120_v55, %v119_v53  ;;  %v122_v57 = vmul.f32 0.125, %v114_v54 }
 0x101   :  { %v123_v58 = vmul.f32 0.125, %v121_v56  ;;  %v124_v59 = vmul.f32 %v122_v57, %v122_v57 }
 0x103   :  { %v125_v60 = vsub.f32 %v123_v58, %v124_v59 }
 0x105   :  { %v126_v61 = vmax.f32 %v125_v60, 0.0 }
 0x107   :  { %v127_v62 = vadd.f32 1e-05, %v126_v61 }
 0x109   :  { %446 = vrsqrt.f32 %v127_v62 }
 0x113   :  { %v447_v63 = vpop.eup %446 }
 0x114   :  { %v129_v0 = vmul.f32 %v447_v63, %v26_v38 }
 0x116   :  { %v130_v2 = vmul.f32 %v129_v0, %v122_v57  ;;  %v138_v4 = vrot.slane %v129_v0, %v137_v1 }
 0x118   :  { %v132_v3 = vrot.slane %v130_v2, 7  ;;  %v139_v7 = vmul.f32 %v138_v4, %v108_v43 }
 0x11a   :  { %v134_v6 = vsub.f32 %v26_v38, %v132_v3 }
 0x11c   :  { %v143_v8 = vrot.slane %v134_v6, %v142_v5 }
 0x11e   :  { %v144_v9 = vadd.f32 %v143_v8, %v139_v7 }
 0x120   :  { %408 = vmatmul.mubr.f32.vlgmr.msra.gmra.mrb[0].mxu0 %v144_v9 }
 0x1f3   :  { %v301_v14 = vpop.f32.mrb[0].mxu0 }
 0x1f4   :  { %v302_v15 = vadd.f32 %v301_v14, %v231_v10  ;;  %v409_v16 = vpop.f32.mrb[1].mxu0 }
 0x1f6   :  { %v309_v17 = vadd.f32 %v308_v13, %v302_v15 }
 0x1f8   :  { %v310_v19 = vmax.f32 %v309_v17, 0.0 }
 0x1fa   :  { %v315_v20 = vmul.f32 %v314_v18, %v310_v19 }
 0x1fc   :  { %316 = vadd.xlane.f32.xlu0 %v315_v20 }
 0x289   :  { %v317_v22 = vpop.xlane.xlu0 %316 }
 0x28a   :  { %v322_v23 = vadd.f32 %v321_v21, %v317_v22 }
 0x28c   :  { %324 = vst.msk [vmem:[%s518_s2] sm:$0xff] %vm323_vm2, %v322_v23 }
 0x28d   :  { %329 = vsyncpa [#allocation3], 1 }

</bundles_post_ra>
